<compile_context>
chip_gen: v7x
topology: tpu7x:2x2x1
jax: 0.10.0
libtpu: 0.0.40
codegen_flags: <defaults>
</compile_context>

<pallas_src>
import functools

import jax
import jax.numpy as jnp
from jax import lax
from jax.experimental import pallas as pl
from jax.experimental.pallas import tpu as pltpu


def _round_up(a, b):
    return (a + b - 1) // b * b


def _triplet_tile_kernel(xa_ref, xt_ref, sqc_ref, sqr_ref, tc_ref, tr_ref,
                         o_ref, ap2_ref, an2_ref, *, margin):
    """One (row-tile i, column-tile k) step of the hard-mining triplet loss.

    xa_ref  : (tm, d)  bf16  anchor feature rows
    xt_ref  : (d, tk)  bf16  candidate features, pre-transposed (contraction-major)
    sqc_ref : (tm, 1)  f32   ||x_i||^2 for anchors (exact, f32)
    sqr_ref : (1, tk)  f32   ||x_j||^2 for candidates
    tc_ref  : (tm, 1)  i32   anchor labels    (>= 0 real, -1 padding)
    tr_ref  : (1, tk)  i32   candidate labels (>= 0 real, -1 padding)
    o_ref   : (tm, 1)  f32   per-anchor loss (written on last column step)
    ap2_ref : (tm, 1)  f32   running max squared distance to a positive
    an2_ref : (tm, 1)  f32   running min squared distance to a negative
    """
    k = pl.program_id(1)
    nk = pl.num_programs(1)

    @pl.when(k == 0)
    def _init():
        ap2_ref[...] = jnp.full_like(ap2_ref, -jnp.inf)
        an2_ref[...] = jnp.full_like(an2_ref, jnp.inf)

    # bf16 x bf16 -> f32 accumulate: native MXU path on v5e/v6e/v7x.
    gram = lax.dot_general(xa_ref[...], xt_ref[...],
                           (((1,), (0,)), ((), ())),
                           preferred_element_type=jnp.float32)      # (tm, tk)
    # Squared pairwise distances; the -2 lives here (VPU, hidden under MXU).
    dist2 = sqc_ref[...] + sqr_ref[...] - 2.0 * gram                # (tm, tk)

    tc = tc_ref[...]                                                # (tm, 1)
    tr = tr_ref[...]                                                # (1, tk)
    same = tc == tr                                                 # (tm, tk)
    # Real labels are >= 0 and padding is -1, so `same` can never pair a real
    # anchor with a padded candidate; only the negative mask needs the
    # explicit candidate-validity test.
    neg_mask = jnp.logical_and(jnp.logical_not(same), tr >= 0)

    neg_inf = jnp.float32(-jnp.inf)
    pos_inf = jnp.float32(jnp.inf)
    ap2_ref[...] = jnp.maximum(
        ap2_ref[...],
        jnp.max(jnp.where(same, dist2, neg_inf), axis=1, keepdims=True))
    an2_ref[...] = jnp.minimum(
        an2_ref[...],
        jnp.min(jnp.where(neg_mask, dist2, pos_inf), axis=1, keepdims=True))

    @pl.when(k == nk - 1)
    def _finalize():
        # clamp + sqrt only on the two per-anchor winners (monotone => exact).
        dist_ap = jnp.sqrt(jnp.maximum(ap2_ref[...], 1e-12))
        dist_an = jnp.sqrt(jnp.maximum(an2_ref[...], 1e-12))
        per_anchor = jnp.maximum(dist_ap - dist_an + jnp.float32(margin), 0.0)
        # Padded anchors (label -1) contribute 0.  Anchors with no
        # different-label candidate also end at 0 (dist_an stays +inf).
        o_ref[...] = jnp.where(tc >= 0, per_anchor, 0.0)


def triplet_loss(inputs, targets, margin=0.3, mxu_dtype=jnp.bfloat16):
    """inputs: (n, d) float, targets: (n,) int -> scalar float32 loss."""
    x = jnp.asarray(inputs, jnp.float32)
    t = jnp.asarray(targets, jnp.int32)
    n, d = x.shape

    # Lane-align the contraction dim; zero columns change nothing.
    d_pad = _round_up(d, 128)

    # Tile sizes: 256x256 output tiles when n is big enough (fills v6e/v7x's
    # 256-wide MXUs, halves grid-step overhead vs 128); one full-extent tile
    # padded to a sublane multiple otherwise.
    # TODO(synk): for very large n, grow the anchor tile beyond 256 (subject
    # to per-generation VMEM caps) to cut candidate re-stream HBM traffic.
    if n > 128:
        tm = tk = 256
        n_pad = _round_up(n, 256)
    else:
        n_pad = _round_up(n, 8)
        tm = tk = n_pad
    grid = (n_pad // tm, n_pad // tk)

    pad = n_pad - n
    x_p = jnp.pad(x, ((0, pad), (0, d_pad - d)))
    # Shift labels so every real label is >= 0, pad with -1: validity is then
    # derived from the label sign inside the kernel (two fewer inputs/DMAs).
    t_p = jnp.pad(t - jnp.min(t), (0, pad), constant_values=-1)

    sq = jnp.sum(x_p * x_p, axis=1)              # exact f32 squared norms
    x_mxu = x_p.astype(mxu_dtype)                # (n_pad, d_pad) anchors
    xt_mxu = x_mxu.T                             # (d_pad, n_pad) candidates, one-time transpose

    # Candidate operand: request a third pipeline buffer when it is actually
    # streamed (>= 2 column steps); guarded so older jax still works.
    cand_map = lambda i, k: (0, k)
    n_cand_bufs = 2
    cand_spec = pl.BlockSpec((d_pad, tk), cand_map)
    if grid[1] >= 2 and hasattr(pl, "Buffered"):
        try:
            cand_spec = pl.BlockSpec((d_pad, tk), cand_map,
                                     pipeline_mode=pl.Buffered(3))
            n_cand_bufs = 3
        except TypeError:
            pass  # pipeline_mode not supported in this jax; default 2 buffers

    # Scoped-VMEM: only raise the limit when the pipelined footprint is large
    # (v5e default 16 MiB, v6e/v7x 32 MiB); stay well under v7x's 64 MiB.
    itemsize = x_mxu.dtype.itemsize
    est = (2 * tm * d_pad * itemsize                 # anchors, double buffered
           + n_cand_bufs * d_pad * tk * itemsize     # streamed candidates
           + 4 * tm * tk)                            # f32 gram/dist2 working set
    cp_kwargs = dict(dimension_semantics=("parallel", "arbitrary"))
    if est > 8 * 1024 * 1024:
        cp_kwargs["vmem_limit_bytes"] = min(48 * 1024 * 1024,
                                            max(32 * 1024 * 1024, 2 * est))

    kernel = functools.partial(_triplet_tile_kernel, margin=float(margin))
    per_anchor = pl.pallas_call(
        kernel,
        out_shape=jax.ShapeDtypeStruct((n_pad, 1), jnp.float32),
        grid_spec=pltpu.PrefetchScalarGridSpec(
            num_scalar_prefetch=0,
            grid=grid,
            in_specs=[
                pl.BlockSpec((tm, d_pad), lambda i, k: (i, 0)),   # anchors (bf16)
                cand_spec,                                        # candidates^T (bf16)
                pl.BlockSpec((tm, 1), lambda i, k: (i, 0)),       # ||x||^2 column
                pl.BlockSpec((1, tk), lambda i, k: (0, k)),       # ||x||^2 row
                pl.BlockSpec((tm, 1), lambda i, k: (i, 0)),       # labels column
                pl.BlockSpec((1, tk), lambda i, k: (0, k)),       # labels row
            ],
            out_specs=pl.BlockSpec((tm, 1), lambda i, k: (i, 0)),
            scratch_shapes=[pltpu.VMEM((tm, 1), jnp.float32),     # running max dist2 (pos)
                            pltpu.VMEM((tm, 1), jnp.float32)],    # running min dist2 (neg)
        ),
        compiler_params=pltpu.CompilerParams(**cp_kwargs),
    )(x_mxu, xt_mxu,
      sq.reshape(n_pad, 1), sq.reshape(1, n_pad),
      t_p.reshape(n_pad, 1), t_p.reshape(1, n_pad))

    # Padded anchors are zeroed in-kernel; final tiny mean over the true n.
    return jnp.sum(per_anchor) / jnp.float32(n)


def _reference_loss(inputs, targets, margin=0.3):
    """Pure-JAX f32 reference mirroring the PyTorch forward."""
    x = inputs.astype(jnp.float32)
    sq = jnp.sum(x ** 2, axis=1, keepdims=True)
    dist2 = sq + sq.T - 2.0 * (x @ x.T)
    dist = jnp.sqrt(jnp.maximum(dist2, 1e-12))
    mask = targets[:, None] == targets[None, :]
    dist_ap = jnp.max(jnp.where(mask, dist, -jnp.inf), axis=1)
    dist_an = jnp.min(jnp.where(mask, jnp.inf, dist), axis=1)
    return jnp.mean(jnp.maximum(dist_ap - dist_an + margin, 0.0))


if __name__ == "__main__":
    key = jax.random.PRNGKey(0)
    k1, k2, k3, k4, k5 = jax.random.split(key, 5)

    # Tolerances: the gram is computed in bf16 on the MXU (f32 accumulation),
    # so results differ from the pure-f32 reference at bf16 rounding level.
    ATOL = RTOL = 2e-2

    # Small case (single full-extent tile): n=8 anchors, 32-d, 4 classes x 2.
    n1, d1 = 8, 32
    x1 = jax.random.normal(k1, (n1, d1), dtype=jnp.float32)
    t1 = jnp.array([0, 0, 1, 1, 2, 2, 3, 3], dtype=jnp.int32)
    loss1 = jax.block_until_ready(triplet_loss(x1, t1, margin=0.3))
    ref1 = _reference_loss(x1, t1, margin=0.3)
    assert jnp.allclose(loss1, ref1, atol=ATOL, rtol=RTOL), (loss1, ref1)

    # Medium case: one 256 tile with row/column/feature padding (160->256, 96->128).
    n2, d2 = 160, 96
    x2 = jax.random.normal(k2, (n2, d2), dtype=jnp.float32)
    t2 = jax.random.randint(k3, (n2,), 0, 8, dtype=jnp.int32)
    loss2 = jax.block_until_ready(triplet_loss(x2, t2, margin=0.3))
    ref2 = _reference_loss(x2, t2, margin=0.3)
    assert jnp.allclose(loss2, ref2, atol=ATOL, rtol=RTOL), (loss2, ref2)

    # Tiled case: 2x2 grid of 256 tiles (exercises accumulator init/finalize
    # across column steps, the buffered candidate stream, and -1 label padding).
    n3, d3 = 320, 96
    x3 = jax.random.normal(k4, (n3, d3), dtype=jnp.float32)
    t3 = jax.random.randint(k5, (n3,), 0, 8, dtype=jnp.int32)
    loss3 = jax.block_until_ready(triplet_loss(x3, t3, margin=0.3))
    ref3 = _reference_loss(x3, t3, margin=0.3)
    assert jnp.allclose(loss3, ref3, atol=ATOL, rtol=RTOL), (loss3, ref3)

    print("KERNEL_OK")
</pallas_src>

<mosaic_0001>
module attributes {stable_mosaic.version = 11 : i64} {
  func.func @_triplet_tile_kernel(%arg0: i32, %arg1: i32, %arg2: memref<8x128xbf16, #tpu.memory_space<vmem>>, %arg3: memref<128x8xbf16, #tpu.memory_space<vmem>>, %arg4: memref<8x1xf32, #tpu.memory_space<vmem>>, %arg5: memref<1x8xf32, #tpu.memory_space<vmem>>, %arg6: memref<8x1xi32, #tpu.memory_space<vmem>>, %arg7: memref<1x8xi32, #tpu.memory_space<vmem>>, %arg8: memref<8x1xf32, #tpu.memory_space<vmem>>, %arg9: memref<8x1xf32, #tpu.memory_space<vmem>>, %arg10: memref<8x1xf32, #tpu.memory_space<vmem>>) attributes {dimension_semantics = [#tpu.dimension_semantics<parallel>, #tpu.dimension_semantics<arbitrary>], iteration_bounds = array<i64: 1, 1>, scalar_prefetch = 0 : i64, scratch_operands = 2 : i64, tpu.core_type = #tpu.core_type<tc>, window_params = [{transform_indices = @transform_0, window_bounds = array<i64: 8, 128>}, {transform_indices = @transform_1, window_bounds = array<i64: 128, 8>}, {transform_indices = @transform_2, window_bounds = array<i64: 8, 1>}, {transform_indices = @transform_3, window_bounds = array<i64: 1, 8>}, {transform_indices = @transform_4, window_bounds = array<i64: 8, 1>}, {transform_indices = @transform_5, window_bounds = array<i64: 1, 8>}, {transform_indices = @transform_6, window_bounds = array<i64: 8, 1>}]} {
    %c0_i32 = arith.constant 0 : i32
    %0 = arith.cmpi eq, %arg1, %c0_i32 : i32
    %1 = arith.extui %0 : i1 to i32
    %c0_i32_0 = arith.constant 0 : i32
    %2 = arith.cmpi ne, %1, %c0_i32_0 : i32
    scf.if %2 {
      %cst_29 = arith.constant 0xFF800000 : f32
      %41 = vector.broadcast %cst_29 : f32 to vector<8x1xf32>
      %c0_30 = arith.constant 0 : index
      %c0_31 = arith.constant 0 : index
      %42 = vector.load %arg9[%c0_30, %c0_31] : memref<8x1xf32, #tpu.memory_space<vmem>>, vector<8x1xf32>
      tpu.vector_store %arg9[%c0_30, %c0_31], %41 {strides = array<i32>} : memref<8x1xf32, #tpu.memory_space<vmem>>, vector<8x1xf32>,
      %cst_32 = arith.constant 0x7F800000 : f32
      %43 = vector.broadcast %cst_32 : f32 to vector<8x1xf32>
      %c0_33 = arith.constant 0 : index
      %c0_34 = arith.constant 0 : index
      %44 = vector.load %arg10[%c0_33, %c0_34] : memref<8x1xf32, #tpu.memory_space<vmem>>, vector<8x1xf32>
      tpu.vector_store %arg10[%c0_33, %c0_34], %43 {strides = array<i32>} : memref<8x1xf32, #tpu.memory_space<vmem>>, vector<8x1xf32>,
    } else {
    }
    %c0 = arith.constant 0 : index
    %c0_1 = arith.constant 0 : index
    %3 = vector.load %arg2[%c0, %c0_1] : memref<8x128xbf16, #tpu.memory_space<vmem>>, vector<8x128xbf16>
    %c0_2 = arith.constant 0 : index
    %c0_3 = arith.constant 0 : index
    %4 = vector.load %arg3[%c0_2, %c0_3] : memref<128x8xbf16, #tpu.memory_space<vmem>>, vector<128x8xbf16>
    %cst = arith.constant dense<0.000000e+00> : vector<8x8xf32>
    %5 = tpu.matmul %3, %4, %cst {dimension_numbers = #tpu.dot_dimension_numbers<[1], [0], [0], [1], [0, 0, 1, 1], [], []>} : vector<8x128xbf16>, vector<128x8xbf16>, vector<8x8xf32> -> vector<8x8xf32>
    %c0_4 = arith.constant 0 : index
    %c0_5 = arith.constant 0 : index
    %6 = vector.load %arg4[%c0_4, %c0_5] : memref<8x1xf32, #tpu.memory_space<vmem>>, vector<8x1xf32>
    %c0_6 = arith.constant 0 : index
    %c0_7 = arith.constant 0 : index
    %7 = vector.load %arg5[%c0_6, %c0_7] : memref<1x8xf32, #tpu.memory_space<vmem>>, vector<1x8xf32>
    %8 = vector.broadcast %6 : vector<8x1xf32> to vector<8x8xf32>
    %9 = vector.broadcast %7 : vector<1x8xf32> to vector<8x8xf32>
    %10 = arith.addf %8, %9 : vector<8x8xf32>
    %cst_8 = arith.constant 2.000000e+00 : f32
    %11 = vector.broadcast %cst_8 : f32 to vector<8x8xf32>
    %12 = arith.mulf %11, %5 : vector<8x8xf32>
    %13 = arith.subf %10, %12 : vector<8x8xf32>
    %c0_9 = arith.constant 0 : index
    %c0_10 = arith.constant 0 : index
    %14 = vector.load %arg6[%c0_9, %c0_10] : memref<8x1xi32, #tpu.memory_space<vmem>>, vector<8x1xi32>
    %c0_11 = arith.constant 0 : index
    %c0_12 = arith.constant 0 : index
    %15 = vector.load %arg7[%c0_11, %c0_12] : memref<1x8xi32, #tpu.memory_space<vmem>>, vector<1x8xi32>
    %16 = vector.broadcast %14 : vector<8x1xi32> to vector<8x8xi32>
    %17 = vector.broadcast %15 : vector<1x8xi32> to vector<8x8xi32>
    %18 = arith.cmpi eq, %16, %17 : vector<8x8xi32>
    %cst_13 = arith.constant dense<true> : vector<8x8xi1>
    %19 = arith.xori %18, %cst_13 : vector<8x8xi1>
    %c0_i32_14 = arith.constant 0 : i32
    %20 = vector.broadcast %c0_i32_14 : i32 to vector<1x8xi32>
    %21 = arith.cmpi sge, %15, %20 : vector<1x8xi32>
    %22 = vector.broadcast %21 : vector<1x8xi1> to vector<8x8xi1>
    %23 = arith.andi %19, %22 : vector<8x8xi1>
    %c0_15 = arith.constant 0 : index
    %c0_16 = arith.constant 0 : index
    %24 = vector.load %arg9[%c0_15, %c0_16] : memref<8x1xf32, #tpu.memory_space<vmem>>, vector<8x1xf32>
    %cst_17 = arith.constant 0xFF800000 : f32
    %25 = vector.broadcast %cst_17 : f32 to vector<8x8xf32>
    %26 = arith.select %18, %13, %25 : vector<8x8xi1>, vector<8x8xf32>
    %cst_18 = arith.constant dense<0xFF800000> : vector<8xf32>
    %27 = vector.multi_reduction <maximumf>, %26, %cst_18 [1] : vector<8x8xf32> to vector<8xf32>
    %28 = vector.shape_cast %27 : vector<8xf32> to vector<8x1xf32>
    %29 = arith.maximumf %24, %28 : vector<8x1xf32>
    %c0_19 = arith.constant 0 : index
    %c0_20 = arith.constant 0 : index
    %30 = vector.load %arg9[%c0_19, %c0_20] : memref<8x1xf32, #tpu.memory_space<vmem>>, vector<8x1xf32>
    tpu.vector_store %arg9[%c0_19, %c0_20], %29 {strides = array<i32>} : memref<8x1xf32, #tpu.memory_space<vmem>>, vector<8x1xf32>,
    %c0_21 = arith.constant 0 : index
    %c0_22 = arith.constant 0 : index
    %31 = vector.load %arg10[%c0_21, %c0_22] : memref<8x1xf32, #tpu.memory_space<vmem>>, vector<8x1xf32>
    %cst_23 = arith.constant 0x7F800000 : f32
    %32 = vector.broadcast %cst_23 : f32 to vector<8x8xf32>
    %33 = arith.select %23, %13, %32 : vector<8x8xi1>, vector<8x8xf32>
    %cst_24 = arith.constant dense<0x7F800000> : vector<8xf32>
    %34 = vector.multi_reduction <minimumf>, %33, %cst_24 [1] : vector<8x8xf32> to vector<8xf32>
    %35 = vector.shape_cast %34 : vector<8xf32> to vector<8x1xf32>
    %36 = arith.minimumf %31, %35 : vector<8x1xf32>
    %c0_25 = arith.constant 0 : index
    %c0_26 = arith.constant 0 : index
    %37 = vector.load %arg10[%c0_25, %c0_26] : memref<8x1xf32, #tpu.memory_space<vmem>>, vector<8x1xf32>
    tpu.vector_store %arg10[%c0_25, %c0_26], %36 {strides = array<i32>} : memref<8x1xf32, #tpu.memory_space<vmem>>, vector<8x1xf32>,
    %c0_i32_27 = arith.constant 0 : i32
    %38 = arith.cmpi eq, %arg1, %c0_i32_27 : i32
    %39 = arith.extui %38 : i1 to i32
    %c0_i32_28 = arith.constant 0 : i32
    %40 = arith.cmpi ne, %39, %c0_i32_28 : i32
    scf.if %40 {
      %c0_29 = arith.constant 0 : index
      %c0_30 = arith.constant 0 : index
      %41 = vector.load %arg9[%c0_29, %c0_30] : memref<8x1xf32, #tpu.memory_space<vmem>>, vector<8x1xf32>
      %cst_31 = arith.constant 9.99999996E-13 : f32
      %42 = vector.broadcast %cst_31 : f32 to vector<8x1xf32>
      %43 = arith.maximumf %41, %42 : vector<8x1xf32>
      %44 = math.sqrt %43 : vector<8x1xf32>
      %c0_32 = arith.constant 0 : index
      %c0_33 = arith.constant 0 : index
      %45 = vector.load %arg10[%c0_32, %c0_33] : memref<8x1xf32, #tpu.memory_space<vmem>>, vector<8x1xf32>
      %cst_34 = arith.constant 9.99999996E-13 : f32
      %46 = vector.broadcast %cst_34 : f32 to vector<8x1xf32>
      %47 = arith.maximumf %45, %46 : vector<8x1xf32>
      %48 = math.sqrt %47 : vector<8x1xf32>
      %49 = arith.subf %44, %48 : vector<8x1xf32>
      %cst_35 = arith.constant 3.000000e-01 : f32
      %50 = vector.broadcast %cst_35 : f32 to vector<8x1xf32>
      %51 = arith.addf %49, %50 : vector<8x1xf32>
      %cst_36 = arith.constant 0.000000e+00 : f32
      %52 = vector.broadcast %cst_36 : f32 to vector<8x1xf32>
      %53 = arith.maximumf %51, %52 : vector<8x1xf32>
      %c0_i32_37 = arith.constant 0 : i32
      %54 = vector.broadcast %c0_i32_37 : i32 to vector<8x1xi32>
      %55 = arith.cmpi sge, %14, %54 : vector<8x1xi32>
      %cst_38 = arith.constant 0.000000e+00 : f32
      %56 = vector.broadcast %cst_38 : f32 to vector<8x1xf32>
      %57 = arith.select %55, %53, %56 : vector<8x1xi1>, vector<8x1xf32>
      %c0_39 = arith.constant 0 : index
      %c0_40 = arith.constant 0 : index
      %58 = vector.load %arg8[%c0_39, %c0_40] : memref<8x1xf32, #tpu.memory_space<vmem>>, vector<8x1xf32>
      tpu.vector_store %arg8[%c0_39, %c0_40], %57 {strides = array<i32>} : memref<8x1xf32, #tpu.memory_space<vmem>>, vector<8x1xf32>,
    } else {
    }
    return
  }
  func.func @transform_0(%arg0: i32, %arg1: i32) -> (i32, i32) {
    %c0_i32 = arith.constant 0 : i32
    %c0_i32_0 = arith.constant 0 : i32
    return %arg0, %c0_i32 : i32, i32
  }
  func.func @transform_1(%arg0: i32, %arg1: i32) -> (i32, i32) {
    %c0_i32 = arith.constant 0 : i32
    %c0_i32_0 = arith.constant 0 : i32
    return %c0_i32, %arg1 : i32, i32
  }
  func.func @transform_2(%arg0: i32, %arg1: i32) -> (i32, i32) {
    %c0_i32 = arith.constant 0 : i32
    %c0_i32_0 = arith.constant 0 : i32
    return %arg0, %c0_i32 : i32, i32
  }
  func.func @transform_3(%arg0: i32, %arg1: i32) -> (i32, i32) {
    %c0_i32 = arith.constant 0 : i32
    %c0_i32_0 = arith.constant 0 : i32
    return %c0_i32, %arg1 : i32, i32
  }
  func.func @transform_4(%arg0: i32, %arg1: i32) -> (i32, i32) {
    %c0_i32 = arith.constant 0 : i32
    %c0_i32_0 = arith.constant 0 : i32
    return %arg0, %c0_i32 : i32, i32
  }
  func.func @transform_5(%arg0: i32, %arg1: i32) -> (i32, i32) {
    %c0_i32 = arith.constant 0 : i32
    %c0_i32_0 = arith.constant 0 : i32
    return %c0_i32, %arg1 : i32, i32
  }
  func.func @transform_6(%arg0: i32, %arg1: i32) -> (i32, i32) {
    %c0_i32 = arith.constant 0 : i32
    %c0_i32_0 = arith.constant 0 : i32
    return %arg0, %c0_i32 : i32, i32
  }
}

</mosaic_0001>

<bundles_post_ra>
// kernel: tpu_custom_call.1
= control target key start
LH: loop header
LB: loop body
LE: loop exit
PB: predicated region body
PF: predicated region fallthrough
CT: control target
= control target key end

     0   :  { %v275_v0 = vmov 0.0   ;;  %vm276_vm0 = vmmov 0   ;;  %v277_v2 = vmov 0   ;;  %vm28_vm1 = vcmask 7168   ;;  %s367_s1 = inlined_call_operand.vmem [shape: bf16[128,8], index: 1, kind: input, shape index: {}]   ;;  %s368_s2 = inlined_call_operand.vmem [shape: f32[8,1], index: 2, kind: input, shape index: {}]   ;;  %s369_s4 = inlined_call_operand.vmem [shape: s32[8,1], index: 4, kind: input, shape index: {}]   ;;  %s370_s0 = inlined_call_operand.vmem [shape: bf16[8,128], index: 0, kind: input, shape index: {}]   ;;  %s371_s5 = inlined_call_operand.vmem [shape: s32[1,8], index: 5, kind: input, shape index: {}]   ;;  %s372_s3 = inlined_call_operand.vmem [shape: f32[1,8], index: 3, kind: input, shape index: {}]   ;;  %s373_s6 = inlined_call_operand.vmem [shape: f32[8,1], index: 6, kind: output, shape index: {}]  }
   0x1   :  { %236 = vmatprep.subr.bf16.mxu0 %v275_v0  ;;  %v263_v1 = vld [vmem:[%s367_s1] sm:$0xff]   ;;  %252 = vmatprep.mubr.msk.bf16.mxu0 %vm276_vm0, %v275_v0  ;;  %v264_v3 = vld [vmem:[%s367_s1 + $0x8] sm:$0xff]   ;;  %v265_v4 = vld [vmem:[%s367_s1 + $0x10] sm:$0xff]   ;;  %v278_v13 = vmov -inf   ;;  %v157_v14 = vlaneseq  ;;  %vm279_vm5 = vmmov 1   ;;  %vm173_vm7 = vcmask 64512  }
   0x2   :  { %262 = vset.pattern.permute.xlu0 %v277_v2  ;;  %237 = vmatpush3.bf16.msra.mxu0 %v263_v1  ;;  %v136_v5 = vld [vmem:[%s368_s2] sm:$0xff]  ;;  %v266_v6 = vld [vmem:[%s367_s1 + $0x18] sm:$0xff]   ;;  %v268_v9 = vld [vmem:[%s367_s1 + $0x28] sm:$0xff]   ;;  %29 = vst.msk [vmem:[#allocation2] sm:$0xff] %vm28_vm1, %v278_v13  ;;  %v280_v35 = vmov inf  }
   0x3   :  { %238 = vmatprep.subr.bf16.mxu0 %v275_v0  ;;  %140 = vperm.xlu0 %262, %v136_v5   ;;  %v334_v7 = vld [vmem:[%s369_s4] sm:$0xff]  ;;  %v269_v10 = vld [vmem:[%s367_s1 + $0x30] sm:$0xff]   ;;  %v270_v11 = vld [vmem:[%s367_s1 + $0x38] sm:$0xff]   ;;  %v158_v15 = vshrl.u32 %v157_v14, 7  ;;  %30 = vst.msk [vmem:[#allocation3] sm:$0xff] %vm28_vm1, %v280_v35 }
   0x4   :  { %v267_v8 = vld [vmem:[%s367_s1 + $0x20] sm:$0xff]   ;;  %vm211_vm13 = vcmp.ge.s32.totalorder %v334_v7, 0 }
   0x5   :  { %v31_v12 = vld [vmem:[%s370_s0] sm:$0xf]  ;;  %v159_v18 = vsub.s32 0, %v158_v15 }
   0x6   :  { %239 = vmatpush3.bf16.msra.mxu0 %v264_v3  ;;  %v153_v16 = vld [vmem:[%s371_s5] sm:$0x1] }
   0x7   :  { %240 = vmatprep.subr.bf16.mxu0 %v275_v0  ;;  %155 = vperm.xlu0 %262, %v334_v7   ;;  %vm163_vm2 = vcmp.ge.s32.totalorder %v153_v16, 0  ;;  %v160_v20 = vrot.slane %v153_v16, %v159_v18  ;;  %v226_v22 = vld [vmem:[%s372_s3] ss:$0 sm:$0xff] }
   0x8   :  { %v164_v19 = vsel %vm163_vm2, 1, %v277_v2 }
   0x9   :  { %v168_v23 = vrot.slane %v164_v19, %v159_v18  ;;  %v171_v36 = vld [vmem:[#allocation2] sm:$0xff] }
   0xa   :  { %241 = vmatpush3.bf16.msra.mxu0 %v265_v4  ;;  %v180_v39 = vld [vmem:[#allocation3] sm:$0xff] }
   0xb   :  { %242 = vmatprep.subr.bf16.mxu0 %v275_v0  ;;  %vm169_vm4 = vcmp.eq.s32.totalorder %v168_v23, 1 }
   0xe   :  { %243 = vmatpush3.bf16.msra.mxu0 %v266_v6 }
   0xf   :  { %244 = vmatprep.subr.bf16.mxu0 %v275_v0 }
  0x12   :  { %245 = vmatpush3.bf16.msra.mxu0 %v267_v8 }
  0x13   :  { %246 = vmatprep.subr.bf16.mxu0 %v275_v0 }
  0x16   :  { %247 = vmatpush3.bf16.msra.mxu0 %v268_v9 }
  0x17   :  { %248 = vmatprep.subr.bf16.mxu0 %v275_v0 }
  0x1a   :  { %249 = vmatpush3.bf16.msra.mxu0 %v269_v10 }
  0x1b   :  { %250 = vmatprep.subr.bf16.mxu0 %v275_v0 }
  0x1e   :  { %251 = vmatpush3.bf16.msra.mxu0 %v270_v11 }
  0x21   :  { %253 = vmatmul.mubr.bf16.vlgmr.msra.gmra.mrb[0].mxu0 %v31_v12 }
  0x82   :  { %v141_v17 = vpop.permute.xlu0 %140 }
  0x83   :  { %v149_v24 = vadd.f32 %v226_v22, %v141_v17 }
  0x86   :  { %v156_v21 = vpop.permute.xlu0 %155 }
  0x87   :  { %vm161_vm3 = vcmp.eq.s32.totalorder %v156_v21, %v160_v20 }
  0x88   :  { %vm162_vm6 = vmxor %vm161_vm3, %vm279_vm5 }
  0x89   :  { %vm170_vm8 = vmand %vm162_vm6, %vm169_vm4 }
  0xf4   :  { %v130_v25 = vpop.f32.mrb[0].mxu0 }
  0xf5   :  { %v150_v26 = vmul.f32 2.0, %v130_v25  ;;  %v254_v27 = vpop.f32.mrb[1].mxu0 }
  0xf6   :  { %v133_v28 = vpop.f32.mrb[2].mxu0 }
  0xf7   :  { %v151_v29 = vsub.f32 %v149_v24, %v150_v26  ;;  %v255_v30 = vpop.f32.mrb[3].mxu0 }
  0xf9   :  { %v172_v31 = vsel %vm161_vm3, %v151_v29, -inf  ;;  %v181_v32 = vsel %vm170_vm8, %v151_v29, inf }
  0xfa   :  { %v174_v33 = vsel %vm173_vm7, %v172_v31, -inf  ;;  %v182_v34 = vsel %vm173_vm7, %v181_v32, inf }
  0xfb   :  { %175 = vmax.xlane.f32.xlu1 %v174_v33 }
  0xff   :  { %183 = vmin.xlane.f32.xlu1 %v182_v34 }
 0x188   :  { %v176_v37 = vpop.xlane.xlu1 %175 }
 0x189   :  { %v177_v38 = vmax.f32 %v171_v36, %v176_v37 }
 0x18b   :  { %179 = vst.msk [vmem:[#allocation2] sm:$0xff] %vm28_vm1, %v177_v38 }
 0x18c   :  { %v184_v40 = vpop.xlane.xlu1 %183 }
 0x18d   :  { %v185_v41 = vmin.f32 %v180_v39, %v184_v40 }
 0x18f   :  { %186 = vst.msk [vmem:[#allocation3] sm:$0xff] %vm28_vm1, %v185_v41 }
 0x192   :  { %v190_v42 = vld [vmem:[#allocation2] sm:$0xff] }
 0x193   :  { %v191_v43 = vmax.f32 %v190_v42, 1e-12 }
 0x195   :  { %271 = vrsqrt.f32 %v191_v43  ;;  %vm194_vm9 = vcmp.eq.f32.partialorder %v191_v43, inf  ;;  %v197_v51 = vand.u32 2147483648, %v191_v43  ;;  %vm196_vm11 = vcmp.eq.f32.partialorder %v191_v43, 0.0 }
 0x196   :  { %v199_v44 = vld [vmem:[#allocation3] sm:$0xff] }
 0x197   :  { %v200_v45 = vmax.f32 %v199_v44, 1e-12 }
 0x199   :  { %273 = vrsqrt.f32 %v200_v45  ;;  %vm203_vm10 = vcmp.eq.f32.partialorder %v200_v45, inf  ;;  %v206_v52 = vand.u32 2147483648, %v200_v45  ;;  %vm205_vm12 = vcmp.eq.f32.partialorder %v200_v45, 0.0 }
 0x19f   :  { %v272_v46 = vpop.eup %271 }
 0x1a0   :  { %v193_v47 = vmul.f32 %v272_v46, %v191_v43 }
 0x1a2   :  { %v195_v49 = vsel %vm194_vm9, %v191_v43, %v193_v47 }
 0x1a3   :  { %v274_v48 = vpop.eup %273  ;;  %v198_v54 = vsel %vm196_vm11, %v197_v51, %v195_v49 }
 0x1a4   :  { %v202_v50 = vmul.f32 %v274_v48, %v200_v45 }
 0x1a6   :  { %v204_v53 = vsel %vm203_vm10, %v200_v45, %v202_v50 }
 0x1a7   :  { %v207_v55 = vsel %vm205_vm12, %v206_v52, %v204_v53 }
 0x1a8   :  { %v208_v56 = vsub.f32 %v198_v54, %v207_v55 }
 0x1aa   :  { %v209_v57 = vadd.f32 0.3, %v208_v56 }
 0x1ac   :  { %v210_v58 = vmax.f32 %v209_v57, 0.0 }
 0x1ae   :  { %v212_v59 = vsel %vm211_vm13, %v210_v58, 0.0 }
 0x1af   :  { %213 = vst.msk [vmem:[%s373_s6] sm:$0xff] %vm28_vm1, %v212_v59 }

</bundles_post_ra>
